<compile_context>
chip_gen: v6e
topology: v6e:2x2x1
jax: 0.10.0
libtpu: 0.0.40
codegen_flags: <defaults>
</compile_context>

<pallas_src>
import jax
import jax.numpy as jnp
from jax import lax
from jax.experimental import pallas as pl
from jax.experimental.pallas import tpu as pltpu


def _gather_kernel(idx_ref, table_ref, out_ref):
    # idx_ref:   SMEM int32  [batch]           (scalar-prefetched term indices)
    # table_ref: VMEM float32 [num_terms,H,W]  (full table, resident, one DMA)
    # out_ref:   VMEM float32 [tb,H,W]         (output slab for this grid step)
    tb = out_ref.shape[0]
    batch = idx_ref.shape[0]
    base = pl.program_id(0) * tb

    def body(t, carry):
        # Clamp so the padded tail of a partial last block never reads past
        # the SMEM index array; those rows are dropped from the HBM writeback
        # by Pallas anyway.
        b = jnp.minimum(base + t, batch - 1)
        out_ref[t] = table_ref[idx_ref[b]]  # pure VMEM row copy, no cast
        return carry

    # Unrolled so loads/stores of consecutive rows co-issue (vst-bound rather
    # than scalar/branch-bound).
    lax.fori_loop(0, tb, body, 0, unroll=max(1, min(8, tb)))


def dummy_net_forward(indices, values_table, *, tb=512, force_kernel=False):
    """Pallas equivalent of DummyNet.forward over a batch of term indices.

    indices:      int [batch]               (Term keys encoded as ints)
    values_table: f32 [num_terms, H, W]     (stacked dict values)
    returns:      f32 [batch, H, W]
    """
    batch = indices.shape[0]
    num_terms, H, W = values_table.shape

    if batch == 0:
        return jnp.zeros((0, H, W), values_table.dtype)

    # Validate indices: an OOB gather inside the kernel would be a silent OOB
    # VMEM read (no runtime check on TPU).
    indices = jnp.clip(indices.astype(jnp.int32), 0, num_terms - 1)

    out_bytes = batch * H * W * values_table.dtype.itemsize
    if not force_kernel and out_bytes <= 64 * 1024:
        # Tiny batch: pallas_call launch + grid setup costs more than the
        # whole gather; plain XLA gather wins.
        return jnp.take(values_table, indices, axis=0)

    # Per-step chunk of batch rows.  tb=512 -> 4 MiB slab, 8 MiB double
    # buffered; keep >= 2 chunks (when batch allows) so both v7x TensorCores
    # participate.
    tb = min(tb, batch)
    if batch > 8 and pl.cdiv(batch, tb) < 2:
        tb = max(8, pl.cdiv(batch, 2))
    grid = pl.cdiv(batch, tb)

    grid_spec = pltpu.PrefetchScalarGridSpec(
        num_scalar_prefetch=1,
        grid=(grid,),
        in_specs=[
            # Whole table resident in VMEM: constant block index -> one DMA,
            # reused by every grid step (duplicated per TC on v7x — free at
            # 64 KB).
            pl.BlockSpec((num_terms, H, W), lambda g, idx: (0, 0, 0)),
        ],
        # One contiguous lane-dense (tb, H, W) output slab per step; the last
        # (possibly partial) block's out-of-range rows are masked on writeback.
        out_specs=pl.BlockSpec((tb, H, W), lambda g, idx: (g, 0, 0)),
    )

    table_bytes = num_terms * H * W * values_table.dtype.itemsize
    return pl.pallas_call(
        _gather_kernel,
        out_shape=jax.ShapeDtypeStruct((batch, H, W), values_table.dtype),
        grid_spec=grid_spec,
        compiler_params=pltpu.CompilerParams(
            # Independent chunks: lets v7x split the grid across its 2 TCs.
            dimension_semantics=("parallel",),
        ),
        # Pure memory op: no flops; table read + indices read + output write.
        cost_estimate=pl.CostEstimate(
            flops=0,
            transcendentals=0,
            bytes_accessed=table_bytes + batch * 4 + out_bytes,
        ),
    )(indices, values_table)


if __name__ == "__main__":
    key = jax.random.PRNGKey(0)

    # Synthetic "values" dict: 8 Term keys, each mapping to a (16, 128) tensor.
    # TODO(synk): real DummyNet keys are ProbLog Terms; they are encoded as
    # integer indices 0..num_terms-1 outside the kernel, and the
    # requires_grad=True bookkeeping has no Pallas equivalent.
    num_terms, H, W = 8, 16, 128
    values_table = jax.random.normal(key, (num_terms, H, W), dtype=jnp.float32)

    # 1) Tiny batch (the DummyNet demo case): auto path -> plain XLA gather.
    x_small = jnp.array([3, 6], dtype=jnp.int32)
    out_small = jax.block_until_ready(dummy_net_forward(x_small, values_table))
    assert out_small.shape == (2, H, W) and out_small.dtype == jnp.float32
    assert bool(jnp.array_equal(out_small, values_table[x_small]))

    # 2) Same tiny batch forced through the Pallas kernel.
    out_small_k = jax.block_until_ready(
        dummy_net_forward(x_small, values_table, force_kernel=True))
    assert bool(jnp.array_equal(out_small_k, values_table[x_small]))

    # 3) Batch with a tail remainder (batch % tb != 0): kernel path with two
    #    grid chunks and a masked partial last block.
    x_big = jax.random.randint(
        jax.random.fold_in(key, 1), (37,), 0, num_terms, dtype=jnp.int32)
    out_big = jax.block_until_ready(dummy_net_forward(x_big, values_table))
    assert out_big.shape == (37, H, W)
    assert bool(jnp.array_equal(out_big, values_table[x_big]))

    print("KERNEL_OK")
</pallas_src>

<mosaic_0001>
module attributes {stable_mosaic.version = 11 : i64} {
  func.func @_gather_kernel(%arg0: i32, %arg1: memref<2xi32, #tpu.memory_space<smem>>, %arg2: memref<8x16x128xf32, #tpu.memory_space<vmem>>, %arg3: memref<2x16x128xf32, #tpu.memory_space<vmem>>) attributes {dimension_semantics = [#tpu.dimension_semantics<parallel>], iteration_bounds = array<i64: 1>, scalar_prefetch = 1 : i64, scratch_operands = 0 : i64, tpu.core_type = #tpu.core_type<tc>, window_params = [{pipeline_mode = #tpu.pipeline_mode<synchronous>, transform_indices = @transform_0, window_bounds = array<i64: 8, 16, 128>}, {transform_indices = @transform_1, window_bounds = array<i64: 2, 16, 128>}]} {
    %c2_i32 = arith.constant 2 : i32
    %0 = arith.muli %arg0, %c2_i32 : i32
    %c0_i32 = arith.constant 0 : i32
    %1 = arith.addi %0, %c0_i32 : i32
    %c1_i32 = arith.constant 1 : i32
    %2 = arith.minsi %1, %c1_i32 : i32
    %3 = arith.index_cast %2 : i32 to index
    %4 = memref.load %arg1[%3] : memref<2xi32, #tpu.memory_space<smem>>
    %5 = arith.index_cast %4 : i32 to index
    %c0 = arith.constant 0 : index
    %c0_0 = arith.constant 0 : index
    %6 = vector.load %arg2[%5, %c0, %c0_0] : memref<8x16x128xf32, #tpu.memory_space<vmem>>, vector<1x16x128xf32>
    %7 = vector.shape_cast %6 : vector<1x16x128xf32> to vector<16x128xf32>
    %8 = arith.index_cast %c0_i32 : i32 to index
    %c0_1 = arith.constant 0 : index
    %c0_2 = arith.constant 0 : index
    %9 = vector.load %arg3[%8, %c0_1, %c0_2] : memref<2x16x128xf32, #tpu.memory_space<vmem>>, vector<1x16x128xf32>
    %10 = vector.shape_cast %9 : vector<1x16x128xf32> to vector<16x128xf32>
    %11 = vector.shape_cast %7 : vector<16x128xf32> to vector<1x16x128xf32>
    tpu.vector_store %arg3[%8, %c0_1, %c0_2], %11 {strides = array<i32>} : memref<2x16x128xf32, #tpu.memory_space<vmem>>, vector<1x16x128xf32>,
    %c1_i32_3 = arith.constant 1 : i32
    %12 = arith.addi %0, %c1_i32_3 : i32
    %c1_i32_4 = arith.constant 1 : i32
    %13 = arith.minsi %12, %c1_i32_4 : i32
    %14 = arith.index_cast %13 : i32 to index
    %15 = memref.load %arg1[%14] : memref<2xi32, #tpu.memory_space<smem>>
    %16 = arith.index_cast %15 : i32 to index
    %c0_5 = arith.constant 0 : index
    %c0_6 = arith.constant 0 : index
    %17 = vector.load %arg2[%16, %c0_5, %c0_6] : memref<8x16x128xf32, #tpu.memory_space<vmem>>, vector<1x16x128xf32>
    %18 = vector.shape_cast %17 : vector<1x16x128xf32> to vector<16x128xf32>
    %19 = arith.index_cast %c1_i32_3 : i32 to index
    %c0_7 = arith.constant 0 : index
    %c0_8 = arith.constant 0 : index
    %20 = vector.load %arg3[%19, %c0_7, %c0_8] : memref<2x16x128xf32, #tpu.memory_space<vmem>>, vector<1x16x128xf32>
    %21 = vector.shape_cast %20 : vector<1x16x128xf32> to vector<16x128xf32>
    %22 = vector.shape_cast %18 : vector<16x128xf32> to vector<1x16x128xf32>
    tpu.vector_store %arg3[%19, %c0_7, %c0_8], %22 {strides = array<i32>} : memref<2x16x128xf32, #tpu.memory_space<vmem>>, vector<1x16x128xf32>,
    %c2_i32_9 = arith.constant 2 : i32
    return
  }
  func.func @transform_0(%arg0: i32, %arg1: memref<2xi32, #tpu.memory_space<smem>>) -> (i32, i32, i32) {
    %c0_i32 = arith.constant 0 : i32
    %c0_i32_0 = arith.constant 0 : i32
    %c0_i32_1 = arith.constant 0 : i32
    %c0_i32_2 = arith.constant 0 : i32
    return %c0_i32, %c0_i32_0, %c0_i32_1 : i32, i32, i32
  }
  func.func @transform_1(%arg0: i32, %arg1: memref<2xi32, #tpu.memory_space<smem>>) -> (i32, i32, i32) {
    %c0_i32 = arith.constant 0 : i32
    %c0_i32_0 = arith.constant 0 : i32
    %c0_i32_1 = arith.constant 0 : i32
    return %arg0, %c0_i32, %c0_i32_0 : i32, i32, i32
  }
}

</mosaic_0001>

<bundles_post_ra>
// kernel: tpu_custom_call.1
= control target key start
LH: loop header
LB: loop body
LE: loop exit
PB: predicated region body
PF: predicated region fallthrough
CT: control target
= control target key end

     0   :  { %s132_s9 = smov [#allocation3]   ;;  %s167_s0 = inlined_call_operand.hbm [shape: s32[2], index: 0, kind: input, shape index: {}]   ;;  %s168_s1 = inlined_call_operand.hbm [shape: f32[8,16,128], index: 1, kind: input, shape index: {}]   ;;  %s169_s2 = inlined_call_operand.hbm [shape: f32[2,16,128], index: 2, kind: output, shape index: {}]  }
   0x1   :  { %8 = dma.hbm_to_smem %s167_s0, 16, %s132_s9, [#allocation2] }
   0x2   :  { %126 = dma.done.wait [#allocation2], 16 }
   0x3   :  { %127 = vsyncadd [#allocation2], 4294967280 }
   0x4   :  { %10 = sfence }
   0x5   :  { %11 = vsyncpa [#allocation5], 0 }
   0x6   :  { %12 = vsyncpa [#allocation6], 0  ;;  %s133_s12 = smov [#allocation4]  }
   0x7   :  { %s18_s13 = sshll.u32 %s133_s12, 4  ;;  %s19_s13 = int_to_ptr.vmem [resolvable:$true] %s18_s13 }
   0x8   :  { %s94_s14 = scalar_lea.vmem %s19_s13, 2048  ;;  %p99_p1 = scmp.lt.s32.totalorder %s19_s13, %s19_s13 }
   0x9   :  { %p95_p0 = scmp.ne.s32.totalorder %s19_s13, %s94_s14  ;;  %p100_p2 = scmp.lt.s32.totalorder %s94_s14, %s94_s14 }
   0xb   :  { %p101_p3 = por %p100_p2, %p99_p1 }
   0xd   :  { %p102_p4 = pnand %p101_p3, %p95_p0 }
   0xf   :  { %105 = shalt.err (!%p102_p4)
}
  0x10   :  { %s134_s15 = smov 128   ;;  %s135_s16 = smov 8  }
  0x11   :  { %24 = dma.hbm_to_vmem [thread:$0]  %s168_s1, 2048, %s19_s13, [#allocation5], %s134_s15, %s134_s15, %s135_s16  }
  0x12   :  { %128 = dma.done.wait [#allocation5], 2048  }
  0x13   :  { %129 = vsyncadd [#allocation5], 4294965248  ;;  %s31_s18 = sld [smem:[#allocation3]]  ;;  %s136_s20 = smov [#allocation7]  }
  0x14   :  { %s71_s19 = sld [smem:[#allocation3 + $0x1]]  ;;  %s54_s21 = sshll.u32 %s136_s20, 4  ;;  %s55_s21 = int_to_ptr.vmem [resolvable:$true] %s54_s21 }
  0x15   :  { %s106_s1 = scalar_lea.vmem %s55_s21, 512  ;;  %p111_p6 = scmp.lt.s32.totalorder %s55_s21, %s55_s21 }
  0x16   :  { %p107_p5 = scmp.ne.s32.totalorder %s55_s21, %s106_s1  ;;  %p112_p7 = scmp.lt.s32.totalorder %s106_s1, %s106_s1 }
  0x18   :  { %p113_p8 = por %p112_p7, %p111_p6 }
  0x19   :  { %s70_s22 = sshll.u32 %s31_s18, 4 }
  0x1a   :  { %s72_s23 = sshll.u32 %s71_s19, 4  ;;  %s33_s24 = scalar_lea.vmem [#allocation4], %s70_s22 }
  0x1b   :  { %v34_v0 = vld [vmem:[%s33_s24] sm:$0xff]  ;;  %v35_v1 = vld [vmem:[%s33_s24 + $0x8] sm:$0xff]  ;;  %s43_s25 = scalar_lea.vmem [#allocation4], %s72_s23  ;;  %p114_p9 = pnand %p113_p8, %p107_p5 }
  0x1c   :  { %36 = vst [vmem:[#allocation7] sm:$0xff] %v34_v0  ;;  %37 = vst [vmem:[#allocation7 + $0x8] sm:$0xff] %v35_v1  ;;  %v44_v2 = vld [vmem:[%s43_s25] sm:$0xff]  ;;  %v45_v3 = vld [vmem:[%s43_s25 + $0x8] sm:$0xff] }
  0x1d   :  { %47 = vst [vmem:[#allocation7 + $0x10] sm:$0xff] %v44_v2  ;;  %48 = vst [vmem:[#allocation7 + $0x18] sm:$0xff] %v45_v3 }
  0x1e   :  { %117 = shalt.err (!%p114_p9)
}
  0x1f   :  { %60 = dma.vmem_to_hbm [thread:$0]  %s55_s21, 512, %s169_s2, [#allocation6], %s134_s15, %s134_s15, %s135_s16  }
  0x20   :  { %130 = dma.done.wait [#allocation6], 512  }
  0x21   :  { %131 = vsyncadd [#allocation6], 4294966784 }
  0x22   :  { %64 = vsyncpa [#allocation5], 1 }
  0x23   :  { %65 = vsyncpa [#allocation6], 1 }

</bundles_post_ra>
